<compile_context>
chip_gen: v7x
topology: tpu7x:2x2x1
jax: 0.10.0
libtpu: 0.0.40
codegen_flags: <defaults>
</compile_context>

<pallas_src>
import functools
from typing import NamedTuple

import jax
import jax.numpy as jnp
from jax.experimental import pallas as pl
from jax.experimental.pallas import tpu as pltpu


LANE = 128                      # TPU lane width; segment padding granularity
_COMPUTE_DTYPE = jnp.bfloat16   # weight / matmul-input dtype (f32 accumulate)


def _round_up(x, m):
    return (x + m - 1) // m * m


class Meta(NamedTuple):
    in_dim: int
    out_dim: int
    d0: int        # branch0 width          = out_dim // 8 * 3
    half: int      # layer-1 width of b1/2/3 = out_dim // 2
    q: int         # out_dim // 4
    e: int         # out_dim // 8
    s0: int        # (padded) branch0 segment width in the fused layer-1 output
    s1: int        # (padded) `half` segment width
    fuse_l2: bool  # True -> block-diagonal fused layer 2 (only when half < 128)


class _TpuCfg(NamedTuple):
    m_gran: int          # MXU M-dim granularity
    vmem_budget: int     # scoped-VMEM budget (bytes), with physical headroom
    max_tile_b: int
    min_grid_steps: int  # >=2 on v7x so both TensorCores get batch tiles


@functools.lru_cache(maxsize=None)
def _tpu_config() -> _TpuCfg:
    try:
        kind = jax.devices()[0].device_kind.lower()
    except Exception:  # pragma: no cover
        kind = ""
    if "v7" in kind:                     # 64 MiB VMEM, 2 TC/chip, 256-row MXU
        return _TpuCfg(256, 48 * 2**20, 512, 2)
    if "v6" in kind:                     # 128 MiB VMEM, 256-row MXU
        return _TpuCfg(256, 96 * 2**20, 1024, 1)
    if "v5" in kind or "v4" in kind:     # 128 MiB VMEM, 128-row MXU
        return _TpuCfg(128, 96 * 2**20, 1024, 1)
    return _TpuCfg(128, 16 * 2**20, 256, 1)   # unknown / old: conservative


# ---------------------------------------------------------------------------
# Parameter init (PyTorch-equivalent per-branch Linear layers)
# ---------------------------------------------------------------------------
def init_params(key, in_dim, out_dim, dtype=jnp.float32):
    """Weights stored as (in_features, out_features) so kernels do x @ W + b."""
    assert out_dim % 8 == 0, "out_dim must be divisible by 8 (branch widths)"
    dims = {
        "w0":  (in_dim, out_dim // 8 * 3),
        "w1a": (in_dim, out_dim // 2),
        "w1b": (out_dim // 2, out_dim // 4),
        "w2a": (in_dim, out_dim // 2),
        "w2b": (out_dim // 2, out_dim // 4),
        "w2c": (out_dim // 4, out_dim // 4),
        "w3a": (in_dim, out_dim // 2),
        "w3b": (out_dim // 2, out_dim // 8),
    }
    params = {}
    keys = jax.random.split(key, len(dims) * 2)
    for i, (name, (fin, fout)) in enumerate(dims.items()):
        kw, kb = keys[2 * i], keys[2 * i + 1]
        bound = 1.0 / (fin ** 0.5)   # matches torch.nn.Linear default init range
        params[name] = jax.random.uniform(kw, (fin, fout), dtype, -bound, bound)
        params[name.replace("w", "b")] = jax.random.uniform(
            kb, (1, fout), dtype, -bound, bound
        )
    return params


# ---------------------------------------------------------------------------
# One-time weight preparation (call OUTSIDE the jitted forward)
# ---------------------------------------------------------------------------
def prepare_weights(params, out_dim, compute_dtype=_COMPUTE_DTYPE):
    """Fuse / pad / cast the per-branch Linear weights ONCE at init time."""
    in_dim = params["w0"].shape[0]
    assert out_dim % 8 == 0, "out_dim must be divisible by 8 (branch widths)"
    d0, half, q, e = out_dim // 8 * 3, out_dim // 2, out_dim // 4, out_dim // 8

    # Block-diagonal layer 2 only while it fits one MXU tile; otherwise de-fuse.
    fuse_l2 = half < LANE
    if fuse_l2:
        s0, s1 = d0, half                       # tiny widths: no padding needed
    else:
        s0, s1 = _round_up(d0, LANE), _round_up(half, LANE)   # lane-aligned slices

    def padc(w, width):   # zero-pad columns (out features)
        return jnp.pad(w, ((0, 0), (0, width - w.shape[1])))

    def padr(w, rows):    # zero-pad rows (in features)
        return jnp.pad(w, ((0, rows - w.shape[0]), (0, 0)))

    # ---- layer 1: the four first Linears share x -> one wide matmul ---------
    w1 = jnp.concatenate(
        [padc(params["w0"], s0), padc(params["w1a"], s1),
         padc(params["w2a"], s1), padc(params["w3a"], s1)], axis=1
    ).astype(compute_dtype)
    b1 = jnp.concatenate(
        [padc(params["b0"], s0), padc(params["b1a"], s1),
         padc(params["b2a"], s1), padc(params["b3a"], s1)], axis=1
    ).astype(jnp.float32)

    if fuse_l2:
        # ---- small `half`: block-diagonal layer 2 (one MXU weight push) -----
        z = lambda r, c: jnp.zeros((r, c), params["w1b"].dtype)
        w2 = jnp.block([
            [params["w1b"], z(half, q),    z(half, e)],
            [z(half, q),    params["w2b"], z(half, e)],
            [z(half, q),    z(half, q),    params["w3b"]],
        ]).astype(compute_dtype)
        b2 = jnp.concatenate(
            [params["b1b"], params["b2b"], params["b3b"]], axis=1
        ).astype(jnp.float32)
        weights = (w1, b1, w2, b2,
                   params["w2c"].astype(compute_dtype),
                   params["b2c"].astype(jnp.float32))
    else:
        # ---- large `half`: de-fused layer 2 (3x less MXU work / DMA / VMEM) -
        # Zero rows absorb the zero-padded activation columns from layer 1.
        weights = (w1, b1,
                   padr(params["w1b"], s1).astype(compute_dtype),
                   params["b1b"].astype(jnp.float32),
                   padr(params["w2b"], s1).astype(compute_dtype),
                   params["b2b"].astype(jnp.float32),
                   padr(params["w3b"], s1).astype(compute_dtype),
                   params["b3b"].astype(jnp.float32),
                   params["w2c"].astype(compute_dtype),
                   params["b2c"].astype(jnp.float32))

    meta = Meta(in_dim, out_dim, d0, half, q, e, s0, s1, fuse_l2)
    return weights, meta


# ---------------------------------------------------------------------------
# Kernel
# ---------------------------------------------------------------------------
def _make_kernel(meta: Meta):
    d0, q, e, s0, s1 = meta.d0, meta.q, meta.e, meta.s0, meta.s1

    def lin(h_bf16, w_ref, b_ref):
        acc = jnp.dot(h_bf16, w_ref[...], preferred_element_type=jnp.float32)
        return jnp.maximum(acc + b_ref[...], 0.0)          # f32 bias + ReLU

    if meta.fuse_l2:
        def kernel(x_ref, w1_ref, b1_ref, w2_ref, b2_ref, w3_ref, b3_ref, out_ref):
            x = x_ref[...].astype(_COMPUTE_DTYPE)
            y1 = lin(x, w1_ref, b1_ref)                     # (B, d0 + 3*half)
            x0 = y1[:, :d0]
            h_cat = y1[:, s0:].astype(_COMPUTE_DTYPE)       # (B, 3*half)
            y2 = lin(h_cat, w2_ref, b2_ref)                 # block-diagonal layer 2
            x1 = y2[:, :q]
            m2 = y2[:, q:2 * q]
            x3 = y2[:, 2 * q:2 * q + e]
            x2 = lin(m2.astype(_COMPUTE_DTYPE), w3_ref, b3_ref)
            # out_dim segment boundaries are generally not 128-aligned -> keep
            # one full-width lane-dense store of the concatenated branches.
            out_ref[...] = jnp.concatenate([x0, x1, x2, x3], -1).astype(out_ref.dtype)
    else:
        def kernel(x_ref, w1_ref, b1_ref, w1b_ref, b1b_ref, w2b_ref, b2b_ref,
                   w3b_ref, b3b_ref, w2c_ref, b2c_ref, out_ref):
            x = x_ref[...].astype(_COMPUTE_DTYPE)
            y1 = lin(x, w1_ref, b1_ref)                     # (B, s0 + 3*s1)
            x0 = y1[:, :d0]
            # 128-lane aligned hidden segments -> no relayout feeding layer 2.
            h1 = y1[:, s0:s0 + s1].astype(_COMPUTE_DTYPE)
            h2 = y1[:, s0 + s1:s0 + 2 * s1].astype(_COMPUTE_DTYPE)
            h3 = y1[:, s0 + 2 * s1:s0 + 3 * s1].astype(_COMPUTE_DTYPE)
            x1 = lin(h1, w1b_ref, b1b_ref)                  # branch1 output
            m2 = lin(h2, w2b_ref, b2b_ref)                  # branch2 mid
            x3 = lin(h3, w3b_ref, b3b_ref)                  # branch3 output
            x2 = lin(m2.astype(_COMPUTE_DTYPE), w2c_ref, b2c_ref)
            out_ref[...] = jnp.concatenate([x0, x1, x2, x3], -1).astype(out_ref.dtype)

    return kernel


# ---------------------------------------------------------------------------
# Tiling / VMEM sizing
# ---------------------------------------------------------------------------
def _weight_bytes(weights):
    return sum(int(w.size) * w.dtype.itemsize for w in weights)


def _vmem_estimate(tile_b, meta, weights):
    s_total = meta.s0 + 3 * meta.s1
    wbytes = 2 * _weight_bytes(weights)                       # default 2x buffers
    io = 2 * tile_b * (meta.in_dim + meta.out_dim) * 4        # double-buffered tiles
    inter = 2 * tile_b * (s_total + 3 * meta.q + meta.e       # f32/bf16 temporaries
                          + meta.out_dim + meta.in_dim) * 4
    return wbytes + io + inter


def _choose_tile_b(batch, meta, weights, cfg):
    if batch <= cfg.m_gran:
        tile_b = _round_up(batch, 8)
    else:
        # Multiple of the MXU M granularity; big tiles amortize per-step overhead.
        tile_b = min(cfg.max_tile_b, (batch // cfg.m_gran) * cfg.m_gran)
        # v7x: keep >= 2 grid steps so the parallel batch axis feeds both TCs.
        while pl.cdiv(batch, tile_b) < cfg.min_grid_steps and tile_b > cfg.m_gran:
            tile_b = _round_up(tile_b // 2, cfg.m_gran)
    # Guard: resident weights (x2 buffers) + tiles + intermediates must fit VMEM.
    while tile_b > 8 and _vmem_estimate(tile_b, meta, weights) > 0.9 * cfg.vmem_budget:
        tile_b = max(8, _round_up(tile_b // 2, 8))
    return tile_b


# ---------------------------------------------------------------------------
# Forward wrapper
# ---------------------------------------------------------------------------
@functools.partial(jax.jit, static_argnames=("meta",))
def inception1_forward(x, weights, *, meta: Meta):
    batch, in_dim = x.shape
    assert in_dim == meta.in_dim
    out_dim = meta.out_dim
    cfg = _tpu_config()

    tile_b = _choose_tile_b(batch, meta, weights, cfg)
    # Ragged last block handled by Pallas edge-block clipping: no host pad/slice.
    grid = (pl.cdiv(batch, tile_b),)

    kernel = _make_kernel(meta)

    in_specs = [pl.BlockSpec((tile_b, in_dim), lambda i: (i, 0))]   # x: batch-tiled
    for w in weights:   # weights/biases resident across grid (constant index_map)
        in_specs.append(pl.BlockSpec(w.shape, lambda i: (0, 0)))
    out_specs = pl.BlockSpec((tile_b, out_dim), lambda i: (i, 0))

    # Scheduler hint: actual MXU work (no zero-block term in the de-fused path).
    s_total = meta.s0 + 3 * meta.s1
    if meta.fuse_l2:
        l2_flops = 3 * meta.half * (2 * meta.q + meta.e)
    else:
        l2_flops = meta.s1 * (2 * meta.q + meta.e)
    flops = 2 * batch * (in_dim * s_total + l2_flops + meta.q * meta.q)
    bytes_accessed = (_weight_bytes(weights)
                      + batch * (in_dim + out_dim) * x.dtype.itemsize)
    cost = pl.CostEstimate(flops=int(flops), transcendentals=0,
                           bytes_accessed=int(bytes_accessed))

    return pl.pallas_call(
        kernel,
        out_shape=jax.ShapeDtypeStruct((batch, out_dim), x.dtype),
        grid=grid,
        in_specs=in_specs,
        out_specs=out_specs,
        compiler_params=pltpu.CompilerParams(
            dimension_semantics=("parallel",),     # batch tiles shard across TCs
            vmem_limit_bytes=int(cfg.vmem_budget),
        ),
        cost_estimate=cost,
    )(x, *weights)


# ---------------------------------------------------------------------------
# Pure-JAX reference (mirrors kernel's bf16-weight / f32-accumulate math)
# ---------------------------------------------------------------------------
def inception1_ref(x, params):
    def lr(h, w, b):
        hb = h.astype(_COMPUTE_DTYPE).astype(jnp.float32)
        wb = w.astype(_COMPUTE_DTYPE).astype(jnp.float32)
        return jnp.maximum(hb @ wb + b.astype(jnp.float32), 0.0)

    x0 = lr(x, params["w0"], params["b0"])
    x1 = lr(lr(x, params["w1a"], params["b1a"]), params["w1b"], params["b1b"])
    h2 = lr(lr(x, params["w2a"], params["b2a"]), params["w2b"], params["b2b"])
    x2 = lr(h2, params["w2c"], params["b2c"])
    x3 = lr(lr(x, params["w3a"], params["b3a"]), params["w3b"], params["b3b"])
    return jnp.concatenate((x0, x1, x2, x3), axis=-1)


if __name__ == "__main__":
    key = jax.random.PRNGKey(0)

    # Small config exercises the fused layer-2 path (half < 128); the second,
    # still-small config exercises the de-fused / lane-padded path (half = 256).
    configs = [
        (16, 32, 64),     # (batch, in_dim, out_dim)
        (64, 128, 512),
    ]
    for batch, in_dim, out_dim in configs:
        key, kx, kp = jax.random.split(key, 3)
        x = jax.random.normal(kx, (batch, in_dim), jnp.float32)
        params = init_params(kp, in_dim, out_dim)

        # Weight fusion runs ONCE here, outside the jitted forward.
        weights, meta = prepare_weights(params, out_dim)

        out = inception1_forward(x, weights, meta=meta)
        out = jax.block_until_ready(out)

        ref = inception1_ref(x, params)
        assert out.shape == (batch, out_dim), out.shape
        assert jnp.allclose(out, ref, atol=2e-3, rtol=2e-3), (
            f"mismatch vs reference (in_dim={in_dim}, out_dim={out_dim})")

    print("KERNEL_OK")
</pallas_src>

<mosaic_0001>
module attributes {stable_mosaic.version = 11 : i64} {
  func.func @kernel(%arg0: i32, %arg1: memref<16x32xf32, #tpu.memory_space<vmem>>, %arg2: memref<32x120xbf16, #tpu.memory_space<vmem>>, %arg3: memref<1x120xf32, #tpu.memory_space<vmem>>, %arg4: memref<96x40xbf16, #tpu.memory_space<vmem>>, %arg5: memref<1x40xf32, #tpu.memory_space<vmem>>, %arg6: memref<16x16xbf16, #tpu.memory_space<vmem>>, %arg7: memref<1x16xf32, #tpu.memory_space<vmem>>, %arg8: memref<16x64xf32, #tpu.memory_space<vmem>>) attributes {dimension_semantics = [#tpu.dimension_semantics<parallel>], iteration_bounds = array<i64: 1>, scalar_prefetch = 0 : i64, scratch_operands = 0 : i64, tpu.core_type = #tpu.core_type<tc>, window_params = [{transform_indices = @transform_0, window_bounds = array<i64: 16, 32>}, {pipeline_mode = #tpu.pipeline_mode<synchronous>, transform_indices = @transform_1, window_bounds = array<i64: 32, 120>}, {pipeline_mode = #tpu.pipeline_mode<synchronous>, transform_indices = @transform_2, window_bounds = array<i64: 1, 120>}, {pipeline_mode = #tpu.pipeline_mode<synchronous>, transform_indices = @transform_3, window_bounds = array<i64: 96, 40>}, {pipeline_mode = #tpu.pipeline_mode<synchronous>, transform_indices = @transform_4, window_bounds = array<i64: 1, 40>}, {pipeline_mode = #tpu.pipeline_mode<synchronous>, transform_indices = @transform_5, window_bounds = array<i64: 16, 16>}, {pipeline_mode = #tpu.pipeline_mode<synchronous>, transform_indices = @transform_6, window_bounds = array<i64: 1, 16>}, {transform_indices = @transform_7, window_bounds = array<i64: 16, 64>}]} {
    %c0 = arith.constant 0 : index
    %c0_0 = arith.constant 0 : index
    %0 = vector.load %arg1[%c0, %c0_0] : memref<16x32xf32, #tpu.memory_space<vmem>>, vector<16x32xf32>
    %1 = arith.truncf %0 : vector<16x32xf32> to vector<16x32xbf16>
    %c0_1 = arith.constant 0 : index
    %c0_2 = arith.constant 0 : index
    %2 = vector.load %arg2[%c0_1, %c0_2] : memref<32x120xbf16, #tpu.memory_space<vmem>>, vector<32x120xbf16>
    %cst = arith.constant dense<0.000000e+00> : vector<16x120xf32>
    %3 = tpu.matmul %1, %2, %cst {dimension_numbers = #tpu.dot_dimension_numbers<[1], [0], [0], [1], [0, 0, 1, 1], [], []>} : vector<16x32xbf16>, vector<32x120xbf16>, vector<16x120xf32> -> vector<16x120xf32>
    %c0_3 = arith.constant 0 : index
    %c0_4 = arith.constant 0 : index
    %4 = vector.load %arg3[%c0_3, %c0_4] : memref<1x120xf32, #tpu.memory_space<vmem>>, vector<1x120xf32>
    %5 = vector.broadcast %4 : vector<1x120xf32> to vector<16x120xf32>
    %6 = arith.addf %3, %5 : vector<16x120xf32>
    %cst_5 = arith.constant 0.000000e+00 : f32
    %7 = vector.broadcast %cst_5 : f32 to vector<16x120xf32>
    %8 = arith.maximumf %6, %7 : vector<16x120xf32>
    %9 = vector.extract_strided_slice %8 {offsets = [0, 0], sizes = [16, 24], strides = [1, 1]} : vector<16x120xf32> to vector<16x24xf32>
    %10 = vector.extract_strided_slice %8 {offsets = [0, 24], sizes = [16, 96], strides = [1, 1]} : vector<16x120xf32> to vector<16x96xf32>
    %11 = arith.truncf %10 : vector<16x96xf32> to vector<16x96xbf16>
    %c0_6 = arith.constant 0 : index
    %c0_7 = arith.constant 0 : index
    %12 = vector.load %arg4[%c0_6, %c0_7] : memref<96x40xbf16, #tpu.memory_space<vmem>>, vector<96x40xbf16>
    %cst_8 = arith.constant dense<0.000000e+00> : vector<16x40xf32>
    %13 = tpu.matmul %11, %12, %cst_8 {dimension_numbers = #tpu.dot_dimension_numbers<[1], [0], [0], [1], [0, 0, 1, 1], [], []>} : vector<16x96xbf16>, vector<96x40xbf16>, vector<16x40xf32> -> vector<16x40xf32>
    %c0_9 = arith.constant 0 : index
    %c0_10 = arith.constant 0 : index
    %14 = vector.load %arg5[%c0_9, %c0_10] : memref<1x40xf32, #tpu.memory_space<vmem>>, vector<1x40xf32>
    %15 = vector.broadcast %14 : vector<1x40xf32> to vector<16x40xf32>
    %16 = arith.addf %13, %15 : vector<16x40xf32>
    %cst_11 = arith.constant 0.000000e+00 : f32
    %17 = vector.broadcast %cst_11 : f32 to vector<16x40xf32>
    %18 = arith.maximumf %16, %17 : vector<16x40xf32>
    %19 = vector.extract_strided_slice %18 {offsets = [0, 0], sizes = [16, 16], strides = [1, 1]} : vector<16x40xf32> to vector<16x16xf32>
    %20 = vector.extract_strided_slice %18 {offsets = [0, 16], sizes = [16, 16], strides = [1, 1]} : vector<16x40xf32> to vector<16x16xf32>
    %21 = vector.extract_strided_slice %18 {offsets = [0, 32], sizes = [16, 8], strides = [1, 1]} : vector<16x40xf32> to vector<16x8xf32>
    %22 = arith.truncf %20 : vector<16x16xf32> to vector<16x16xbf16>
    %c0_12 = arith.constant 0 : index
    %c0_13 = arith.constant 0 : index
    %23 = vector.load %arg6[%c0_12, %c0_13] : memref<16x16xbf16, #tpu.memory_space<vmem>>, vector<16x16xbf16>
    %cst_14 = arith.constant dense<0.000000e+00> : vector<16x16xf32>
    %24 = tpu.matmul %22, %23, %cst_14 {dimension_numbers = #tpu.dot_dimension_numbers<[1], [0], [0], [1], [0, 0, 1, 1], [], []>} : vector<16x16xbf16>, vector<16x16xbf16>, vector<16x16xf32> -> vector<16x16xf32>
    %c0_15 = arith.constant 0 : index
    %c0_16 = arith.constant 0 : index
    %25 = vector.load %arg7[%c0_15, %c0_16] : memref<1x16xf32, #tpu.memory_space<vmem>>, vector<1x16xf32>
    %26 = vector.broadcast %25 : vector<1x16xf32> to vector<16x16xf32>
    %27 = arith.addf %24, %26 : vector<16x16xf32>
    %cst_17 = arith.constant 0.000000e+00 : f32
    %28 = vector.broadcast %cst_17 : f32 to vector<16x16xf32>
    %29 = arith.maximumf %27, %28 : vector<16x16xf32>
    %30 = tpu.concatenate %9, %19, %29, %21 in 1 : vector<16x24xf32>, vector<16x16xf32>, vector<16x16xf32>, vector<16x8xf32> -> vector<16x64xf32>
    %c0_18 = arith.constant 0 : index
    %c0_19 = arith.constant 0 : index
    %31 = vector.load %arg8[%c0_18, %c0_19] : memref<16x64xf32, #tpu.memory_space<vmem>>, vector<16x64xf32>
    tpu.vector_store %arg8[%c0_18, %c0_19], %30 {strides = array<i32>} : memref<16x64xf32, #tpu.memory_space<vmem>>, vector<16x64xf32>,
    return
  }
  func.func @transform_0(%arg0: i32) -> (i32, i32) {
    %c0_i32 = arith.constant 0 : i32
    %c0_i32_0 = arith.constant 0 : i32
    return %arg0, %c0_i32 : i32, i32
  }
  func.func @transform_1(%arg0: i32) -> (i32, i32) {
    %c0_i32 = arith.constant 0 : i32
    %c0_i32_0 = arith.constant 0 : i32
    %c0_i32_1 = arith.constant 0 : i32
    return %c0_i32, %c0_i32_0 : i32, i32
  }
  func.func @transform_2(%arg0: i32) -> (i32, i32) {
    %c0_i32 = arith.constant 0 : i32
    %c0_i32_0 = arith.constant 0 : i32
    %c0_i32_1 = arith.constant 0 : i32
    return %c0_i32, %c0_i32_0 : i32, i32
  }
  func.func @transform_3(%arg0: i32) -> (i32, i32) {
    %c0_i32 = arith.constant 0 : i32
    %c0_i32_0 = arith.constant 0 : i32
    %c0_i32_1 = arith.constant 0 : i32
    return %c0_i32, %c0_i32_0 : i32, i32
  }
  func.func @transform_4(%arg0: i32) -> (i32, i32) {
    %c0_i32 = arith.constant 0 : i32
    %c0_i32_0 = arith.constant 0 : i32
    %c0_i32_1 = arith.constant 0 : i32
    return %c0_i32, %c0_i32_0 : i32, i32
  }
  func.func @transform_5(%arg0: i32) -> (i32, i32) {
    %c0_i32 = arith.constant 0 : i32
    %c0_i32_0 = arith.constant 0 : i32
    %c0_i32_1 = arith.constant 0 : i32
    return %c0_i32, %c0_i32_0 : i32, i32
  }
  func.func @transform_6(%arg0: i32) -> (i32, i32) {
    %c0_i32 = arith.constant 0 : i32
    %c0_i32_0 = arith.constant 0 : i32
    %c0_i32_1 = arith.constant 0 : i32
    return %c0_i32, %c0_i32_0 : i32, i32
  }
  func.func @transform_7(%arg0: i32) -> (i32, i32) {
    %c0_i32 = arith.constant 0 : i32
    %c0_i32_0 = arith.constant 0 : i32
    return %arg0, %c0_i32 : i32, i32
  }
}

</mosaic_0001>

<bundles_post_ra>
// kernel: inception1_forward.1
= control target key start
LH: loop header
LB: loop body
LE: loop exit
PB: predicated region body
PF: predicated region fallthrough
CT: control target
= control target key end

     0   :  { %v416_v1 = vmov 0.0   ;;  %vm417_vm0 = vmmov 0   ;;  %vm54_vm1 = vcmask 261120   ;;  %s519_s0 = inlined_call_operand.vmem [shape: f32[16,32], index: 0, kind: input, shape index: {}]   ;;  %s520_s1 = inlined_call_operand.vmem [shape: bf16[32,120], index: 1, kind: input, shape index: {}]   ;;  %s521_s2 = inlined_call_operand.vmem [shape: f32[1,120], index: 2, kind: input, shape index: {}]   ;;  %s522_s3 = inlined_call_operand.vmem [shape: bf16[96,40], index: 3, kind: input, shape index: {}]   ;;  %s523_s4 = inlined_call_operand.vmem [shape: f32[1,40], index: 4, kind: input, shape index: {}]   ;;  %s524_s5 = inlined_call_operand.vmem [shape: bf16[16,16], index: 5, kind: input, shape index: {}]   ;;  %s525_s6 = inlined_call_operand.vmem [shape: f32[1,16], index: 6, kind: input, shape index: {}]   ;;  %s526_s7 = inlined_call_operand.hbm [shape: f32[16,64], index: 7, kind: output, shape index: {}]  }
   0x1   :  { %v383_v0 = vld [vmem:[%s520_s1] sm:$0xff]   ;;  %344 = vmatprep.subr.bf16.mxu0 %v416_v1  ;;  %352 = vmatprep.subr.bf16.mxu1 %v416_v1  ;;  %v384_v2 = vld [vmem:[%s520_s1 + $0x8] sm:$0xff]  }
   0x2   :  { %345 = vmatpush3.bf16.msra.mxu0 %v383_v0  ;;  %348 = vmatprep.mubr.msk.bf16.mxu0 %vm417_vm0, %v416_v1  ;;  %v28_v3 = vld [vmem:[%s519_s0] sm:$0xff]  ;;  %v29_v4 = vld [vmem:[%s519_s0 + $0x8] sm:$0xff] }
   0x3   :  { %346 = vmatprep.subr.bf16.mxu0 %v416_v1  ;;  %364 = vmatprep.mubr.msk.bf16.mxu1 %vm417_vm0, %v416_v1  ;;  %v30_v5 = vpack.c.bf16 %v29_v4, %v28_v3 }
   0x6   :  { %347 = vmatpush3.bf16.msra.mxu0 %v384_v2 }
   0x7   :  { %368 = vmatprep.subr.bf16.mxu0 %v416_v1 }
   0x8   :  { %12 = vsyncpa [#allocation3], 0  ;;  %v385_v6 = vld [vmem:[%s522_s3] sm:$0xff]   ;;  %v386_v7 = vld [vmem:[%s522_s3 + $0x8] sm:$0xff]   ;;  %s418_s21 = smov 104   ;;  %vm160_vm2 = vcmask 785408  }
   0x9   :  { %349 = vmatmul.mubr.msk.bf16.vlgmr.msra.gmra.mrb[0].mxu0 %vm54_vm1, %v30_v5  ;;  %353 = vmatpush3.bf16.msra.mxu1 %v385_v6  ;;  %v387_v8 = vld [vmem:[%s522_s3 + $0x10] sm:$0xff]   ;;  %v388_v9 = vld [vmem:[%s522_s3 + $0x18] sm:$0xff]   ;;  %v389_v10 = vld [vmem:[%s522_s3 + $0x20] sm:$0xff]   ;;  %s419_s24 = smov 24   ;;  %s420_s25 = smov 112   ;;  %vm226_vm3 = vcmask 130048  }
   0xa   :  { %370 = vmatprep.mubr.msk.bf16.mxu0 %vm417_vm0, %v416_v1  ;;  %354 = vmatprep.subr.bf16.mxu1 %v416_v1  ;;  %v390_v11 = vld [vmem:[%s522_s3 + $0x28] sm:$0xff]   ;;  %v317_v12 = vld [vmem:[%s521_s2] ss:$0 sm:$0xff]  ;;  %vm289_vm4 = vcmask 195584   ;;  %vm292_vm5 = vcmask 326656   ;;  %vm295_vm6 = vcmask 457728  }
   0xb   :  { %v391_v23 = vld [vmem:[%s524_s5] sm:$0xff]   ;;  %s422_s27 = smov [#allocation2]   ;;  %vm298_vm7 = vcmask 523264  }
   0xc   :  { %369 = vmatpush3.bf16.msra.mxu0 %v391_v23  ;;  %v321_v24 = vld [vmem:[%s523_s4] ss:$0 sm:$0xff]  ;;  %s421_s4 = smov 40   ;;  %s306_s28 = sshll.u32 %s422_s27, 4  ;;  %s307_s28 = int_to_ptr.vmem [resolvable:$true] %s306_s28 }
   0xd   :  { %355 = vmatpush3.bf16.msra.mxu1 %v386_v7  ;;  %v329_v35 = vld [vmem:[%s525_s6] ss:$0 sm:$0xff]  ;;  %s392_s6 = scalar_lea.vmem %s307_s28, 256  ;;  %p397_p1 = scmp.lt.s32.totalorder %s307_s28, %s307_s28 }
   0xe   :  { %356 = vmatprep.subr.bf16.mxu1 %v416_v1  ;;  %p393_p0 = scmp.ne.s32.totalorder %s307_s28, %s392_s6  ;;  %p398_p2 = scmp.lt.s32.totalorder %s392_s6, %s392_s6 }
  0x10   :  { %p399_p3 = por %p398_p2, %p397_p1 }
  0x11   :  { %357 = vmatpush3.bf16.msra.mxu1 %v387_v8 }
  0x12   :  { %358 = vmatprep.subr.bf16.mxu1 %v416_v1  ;;  %p400_p4 = pnand %p399_p3, %p393_p0 }
  0x15   :  { %359 = vmatpush3.bf16.msra.mxu1 %v388_v9 }
  0x16   :  { %360 = vmatprep.subr.bf16.mxu1 %v416_v1 }
  0x19   :  { %361 = vmatpush3.bf16.msra.mxu1 %v389_v10 }
  0x1a   :  { %362 = vmatprep.subr.bf16.mxu1 %v416_v1 }
  0x1d   :  { %363 = vmatpush3.bf16.msra.mxu1 %v390_v11 }
  0xdc   :  { %v92_v13 = vpop.f32.mrb[0].mxu0 }
  0xdd   :  { %v93_v14 = vadd.f32 %v317_v12, %v92_v13  ;;  %v350_v15 = vpop.f32.mrb[1].mxu0 }
  0xde   :  { %v95_v16 = vpop.f32.mrb[2].mxu0 }
  0xdf   :  { %v96_v17 = vadd.f32 %v317_v12, %v95_v16  ;;  %v351_v18 = vpop.f32.mrb[3].mxu0  ;;  %v99_v19 = vmax.f32 %v93_v14, 0.0 }
  0xe1   :  { %v100_v20 = vmax.f32 %v96_v17, 0.0 }
  0xe3   :  { %v101_v21 = vpack.c.bf16 %v100_v20, %v99_v19 }
  0xe5   :  { %122 = vrot.lane.b32.xlu0 %v101_v21, %s418_s21 }
 0x157   :  { %v123_v22 = vpop.permute.xlu0 %122 }
 0x158   :  { %365 = vmatmul.mubr.msk.bf16.vlgmr.msra.gmra.mrb[0].mxu1 %vm160_vm2, %v123_v22 }
 0x22b   :  { %v198_v25 = vpop.f32.mrb[0].mxu1 }
 0x22c   :  { %v199_v26 = vadd.f32 %v321_v24, %v198_v25  ;;  %v366_v27 = vpop.f32.mrb[1].mxu1 }
 0x22d   :  { %v201_v28 = vpop.f32.mrb[2].mxu1 }
 0x22e   :  { %v205_v29 = vmax.f32 %v199_v26, 0.0  ;;  %v202_v30 = vadd.f32 %v321_v24, %v201_v28  ;;  %v367_v31 = vpop.f32.mrb[3].mxu1 }
 0x230   :  { %v206_v32 = vmax.f32 %v202_v30, 0.0  ;;  %275 = vrot.lane.b32.xlu1 %v205_v29, %s419_s24 }
 0x232   :  { %v207_v33 = vpack.c.bf16 %v206_v32, %v205_v29 }
 0x234   :  { %277 = vrot.lane.b32.xlu1 %v206_v32, %s419_s24  ;;  %218 = vrot.lane.b32.xlu0 %v207_v33, %s420_s25 }
 0x2a2   :  { %v276_v44 = vpop.permute.xlu1 %275 }
 0x2a3   :  { %v290_v46 = vsel %vm289_vm4, %v99_v19, %v276_v44 }
 0x2a6   :  { %v219_v34 = vpop.permute.xlu0 %218  ;;  %v278_v45 = vpop.permute.xlu1 %277 }
 0x2a7   :  { %371 = vmatmul.mubr.msk.bf16.vlgmr.msra.gmra.mrb[4].mxu0 %vm226_vm3, %v219_v34  ;;  %v291_v49 = vsel %vm289_vm4, %v100_v20, %v278_v45 }
 0x37a   :  { %v264_v36 = vpop.f32.mrb[4].mxu0 }
 0x37b   :  { %v265_v37 = vadd.f32 %v329_v35, %v264_v36  ;;  %v372_v38 = vpop.f32.mrb[5].mxu0 }
 0x37c   :  { %v267_v39 = vpop.f32.mrb[6].mxu0 }
 0x37d   :  { %v271_v40 = vmax.f32 %v265_v37, 0.0  ;;  %v268_v41 = vadd.f32 %v329_v35, %v267_v39  ;;  %v373_v42 = vpop.f32.mrb[7].mxu0 }
 0x37f   :  { %v272_v43 = vmax.f32 %v268_v41, 0.0  ;;  %283 = vrot.lane.b32.xlu0 %v271_v40, %s421_s4 }
 0x381   :  { %285 = vrot.lane.b32.xlu1 %v272_v43, %s421_s4 }
 0x3f1   :  { %v284_v47 = vpop.permute.xlu0 %283 }
 0x3f2   :  { %v293_v48 = vsel %vm292_vm5, %v290_v46, %v284_v47 }
 0x3f3   :  { %v296_v50 = vsel %vm295_vm6, %v293_v48, %v276_v44  ;;  %v286_v51 = vpop.permute.xlu1 %285 }
 0x3f4   :  { %299 = vst.msk [vmem:[#allocation2] sm:$0xff] %vm298_vm7, %v296_v50  ;;  %v294_v52 = vsel %vm292_vm5, %v291_v49, %v286_v51 }
 0x3f5   :  { %v297_v53 = vsel %vm295_vm6, %v294_v52, %v278_v45 }
 0x3f6   :  { %300 = vst.msk [vmem:[#allocation2 + $0x8] sm:$0xff] %vm298_vm7, %v297_v53 }
 0x3f7   :  { %403 = shalt.err (!%p400_p4)
}
 0x3f8   :  { %s404_s8 = scalar_lea.hbm %s526_s7, 256 }
 0x3f9   :  { %p405_p5 = scmp.ne.s32.totalorder %s526_s7, %s404_s8  ;;  %p408_p6 = scmp.lt.u32.totalorder %s404_s8, %s526_s7 }
 0x3fb   :  { %p410_p7 = pnand %p408_p6, %p405_p5 }
 0x3fd   :  { %413 = shalt.err (!%p410_p7)
}
 0x3fe   :  { %s423_s0 = smov 128   ;;  %s424_s12 = smov 8  }
 0x3ff   :  { %312 = dma.vmem_to_hbm [thread:$0]  %s307_s28, 256, %s526_s7, [#allocation3], %s423_s0, %s423_s0, %s424_s12  }
 0x400   :  { %414 = dma.done.wait [#allocation3], 256  }
 0x401   :  { %415 = vsyncadd [#allocation3], 4294967040 }
 0x402   :  { %316 = vsyncpa [#allocation3], 1 }

</bundles_post_ra>
